<compile_context>
chip_gen: v5e
topology: v5e:2x2
jax: 0.10.0
libtpu: 0.0.40
codegen_flags: <defaults>
</compile_context>

<pallas_src>
import math

import jax
import jax.numpy as jnp
from jax.experimental import pallas as pl
from jax.experimental.pallas import tpu as pltpu


def _make_kernel(G, n, din, dk, dv, dr, scale):
    def kernel(h_ref, w_ref, dt_ref, o_ref):
        # One fused projection for all G graphs in this block:
        #   (G*n, din) @ (din, 2dk+dv+dr)  -- a single MXU push.
        Hf = h_ref[...].reshape(G * n, din)
        P = jnp.dot(Hf, w_ref[...], preferred_element_type=jnp.float32)

        # Split Q/K/V/R; fold the 1/sqrt(dk+dr) scale into Q and R
        # (n*(dk+dr) multiplies instead of n*n on the logits).
        Qs = (P[:, :dk] * scale).reshape(G, n, dk)
        K = P[:, dk:2 * dk].reshape(G, n, dk)
        V = P[:, 2 * dk:2 * dk + dv].reshape(G, n, dv)
        Rs = (P[:, 2 * dk + dv:] * scale).reshape(G, n, dr)

        # RD[g, i, j] = sum_r R[g, i, r] * D[g, i, j, r], with D streamed as
        # Dt[g, r, i, j]: every Dt[:, r] slice is already in the
        # (i sublane, j lane) layout of Q @ K^T, so this is dr plain VPU FMAs
        # on (G, n, n) tiles -- no cross-lane reduce, no relayout.
        Dt = dt_ref[...]                                      # (G, dr, n, n)
        RD = Rs[:, :, 0][:, :, None] * Dt[:, 0]
        for r in range(1, dr):
            RD = RD + Rs[:, :, r][:, :, None] * Dt[:, r]

        logits = jnp.einsum(
            "gik,gjk->gij", Qs, K, preferred_element_type=jnp.float32
        ) + RD                                                # (G, n, n)

        # Row-wise softmax (torch softmax(dim=1)).  Exact normalization: the
        # approximate-reciprocal path is only cheap under the Mosaic lowering
        # and is too coarse for the 1e-3 reference check elsewhere.
        m = jnp.max(logits, axis=-1, keepdims=True)
        p = jnp.exp(logits - m)
        p = p / jnp.sum(p, axis=-1, keepdims=True)

        o_ref[...] = jnp.einsum(
            "gij,gjd->gid", p, V, preferred_element_type=jnp.float32
        ).astype(o_ref.dtype)

    return kernel


def graph_attention_toy_batched(H, D, W, *, dk, dv, dr, graphs_per_block=None):
    """Batched forward.

    H: (B, n, din)   node features per graph
    D: (B, n, n, dr) route information per graph (module's natural layout)
    W: (din, 2*dk + dv + dr) fused projection weight (already transposed
       relative to torch.nn.Linear.weight, so the projection is H @ W).
    Returns (B, n, dv).
    """
    B, n, din = H.shape
    d_out = 2 * dk + dv + dr
    assert W.shape == (din, d_out)
    assert D.shape == (B, n, n, dr)

    G = B if graphs_per_block is None else graphs_per_block
    assert B % G == 0, "graphs_per_block must divide the batch"
    num_blocks = B // G

    # Route tensor in kernel layout (B, dr, n, n): Dt[b, r, i, j] = D[b, i, j, r].
    # TODO(synk): producer-side layout / in-kernel einshape would avoid this
    # extra HBM pass over the largest tensor.
    Dt = jnp.transpose(D, (0, 3, 1, 2))

    scale = 1.0 / math.sqrt(dk + dr)
    kernel = _make_kernel(G, n, din, dk, dv, dr, scale)

    return pl.pallas_call(
        kernel,
        out_shape=jax.ShapeDtypeStruct((B, n, dv), jnp.float32),
        grid=(num_blocks,),
        in_specs=[
            pl.BlockSpec((G, n, din), lambda g: (g, 0, 0)),
            pl.BlockSpec((din, d_out), lambda g: (0, 0)),
            pl.BlockSpec((G, dr, n, n), lambda g: (g, 0, 0, 0)),
        ],
        out_specs=pl.BlockSpec((G, n, dv), lambda g: (g, 0, 0)),
        compiler_params=pltpu.CompilerParams(
            # Graph blocks are independent: shards across both TensorCores on
            # v7x; measured-neutral on v5e/v6e.
            dimension_semantics=("parallel",),
        ),
    )(H, W, Dt)


def graph_attention_toy(H, D, W, *, dk, dv, dr):
    """Single-graph forward, matching GraphAttentionToy.forward(H, D)."""
    out = graph_attention_toy_batched(H[None], D[None], W, dk=dk, dv=dv, dr=dr)
    return out[0]


def reference_single(H, D, W, *, dk, dv, dr):
    """Pure-JAX reference (mirrors the PyTorch module)."""
    P = H @ W
    Q = P[:, :dk]
    K = P[:, dk:2 * dk]
    V = P[:, 2 * dk:2 * dk + dv]
    R = P[:, 2 * dk + dv:]
    RD = jnp.einsum("ir,ijr->ij", R, D)
    scale = 1.0 / math.sqrt(dk + dr)
    w = scale * (Q @ K.T + RD)
    return jax.nn.softmax(w, axis=1) @ V


if __name__ == "__main__":
    # Small shapes consistent with the module's forward:
    #   per graph: H (n, din), D (n, n, dr); batched over B graphs.
    B, n, din, dk, dv, dr = 4, 8, 32, 16, 16, 8
    d_out = 2 * dk + dv + dr

    key = jax.random.PRNGKey(0)
    k_h, k_d, k_w = jax.random.split(key, 3)

    H = jax.random.normal(k_h, (B, n, din), dtype=jnp.float32)
    D = jax.random.normal(k_d, (B, n, n, dr), dtype=jnp.float32)

    # Deterministic init of Linear(din, 2*dk+dv+dr, bias=False), stored as
    # (din, d_out) so the projection is H @ W.
    bound = 1.0 / math.sqrt(din)
    W = jax.random.uniform(
        k_w, (din, d_out), minval=-bound, maxval=bound, dtype=jnp.float32
    )

    ref = jax.vmap(
        lambda h, d: reference_single(h, d, W, dk=dk, dv=dv, dr=dr)
    )(H, D)

    # Whole batch in one block (single grid step).
    out = graph_attention_toy_batched(H, D, W, dk=dk, dv=dv, dr=dr)
    out = jax.block_until_ready(out)
    assert out.shape == (B, n, dv)
    assert jnp.allclose(out, ref, atol=1e-3, rtol=1e-3)

    # Grouped blocks of 2 graphs (2-step parallel grid) -- same results.
    out2 = graph_attention_toy_batched(
        H, D, W, dk=dk, dv=dv, dr=dr, graphs_per_block=2
    )
    out2 = jax.block_until_ready(out2)
    assert jnp.allclose(out2, ref, atol=1e-3, rtol=1e-3)

    # Single-graph path (same signature as the PyTorch forward).
    out0 = graph_attention_toy(H[0], D[0], W, dk=dk, dv=dv, dr=dr)
    out0 = jax.block_until_ready(out0)
    assert jnp.allclose(out0, ref[0], atol=1e-3, rtol=1e-3)

    print("KERNEL_OK")
</pallas_src>

<mosaic_0001>
module attributes {stable_mosaic.version = 11 : i64} {
  func.func @kernel(%arg0: i32, %arg1: memref<4x8x32xf32, #tpu.memory_space<vmem>>, %arg2: memref<32x56xf32, #tpu.memory_space<vmem>>, %arg3: memref<4x8x8x8xf32, #tpu.memory_space<vmem>>, %arg4: memref<4x8x16xf32, #tpu.memory_space<vmem>>) attributes {dimension_semantics = [#tpu.dimension_semantics<parallel>], iteration_bounds = array<i64: 1>, scalar_prefetch = 0 : i64, scratch_operands = 0 : i64, tpu.core_type = #tpu.core_type<tc>, window_params = [{transform_indices = @transform_0, window_bounds = array<i64: 4, 8, 32>}, {pipeline_mode = #tpu.pipeline_mode<synchronous>, transform_indices = @transform_1, window_bounds = array<i64: 32, 56>}, {transform_indices = @transform_2, window_bounds = array<i64: 4, 8, 8, 8>}, {transform_indices = @transform_3, window_bounds = array<i64: 4, 8, 16>}]} {
    %c0 = arith.constant 0 : index
    %c0_0 = arith.constant 0 : index
    %c0_1 = arith.constant 0 : index
    %0 = vector.load %arg1[%c0, %c0_0, %c0_1] : memref<4x8x32xf32, #tpu.memory_space<vmem>>, vector<4x8x32xf32>
    %1 = vector.shape_cast %0 : vector<4x8x32xf32> to vector<32x32xf32>
    %c0_2 = arith.constant 0 : index
    %c0_3 = arith.constant 0 : index
    %2 = vector.load %arg2[%c0_2, %c0_3] : memref<32x56xf32, #tpu.memory_space<vmem>>, vector<32x56xf32>
    %cst = arith.constant dense<0.000000e+00> : vector<32x56xf32>
    %3 = tpu.matmul %1, %2, %cst {dimension_numbers = #tpu.dot_dimension_numbers<[1], [0], [0], [1], [0, 0, 1, 1], [], []>} : vector<32x32xf32>, vector<32x56xf32>, vector<32x56xf32> -> vector<32x56xf32>
    %4 = vector.extract_strided_slice %3 {offsets = [0, 0], sizes = [32, 16], strides = [1, 1]} : vector<32x56xf32> to vector<32x16xf32>
    %cst_4 = arith.constant 0.204124153 : f32
    %5 = vector.broadcast %cst_4 : f32 to vector<32x16xf32>
    %6 = arith.mulf %4, %5 : vector<32x16xf32>
    %7 = vector.shape_cast %6 : vector<32x16xf32> to vector<4x8x16xf32>
    %8 = vector.extract_strided_slice %3 {offsets = [0, 16], sizes = [32, 16], strides = [1, 1]} : vector<32x56xf32> to vector<32x16xf32>
    %9 = vector.shape_cast %8 : vector<32x16xf32> to vector<4x8x16xf32>
    %10 = vector.extract_strided_slice %3 {offsets = [0, 32], sizes = [32, 16], strides = [1, 1]} : vector<32x56xf32> to vector<32x16xf32>
    %11 = vector.shape_cast %10 : vector<32x16xf32> to vector<4x8x16xf32>
    %12 = vector.extract_strided_slice %3 {offsets = [0, 48], sizes = [32, 8], strides = [1, 1]} : vector<32x56xf32> to vector<32x8xf32>
    %cst_5 = arith.constant 0.204124153 : f32
    %13 = vector.broadcast %cst_5 : f32 to vector<32x8xf32>
    %14 = arith.mulf %12, %13 : vector<32x8xf32>
    %15 = vector.shape_cast %14 : vector<32x8xf32> to vector<4x8x8xf32>
    %c0_6 = arith.constant 0 : index
    %c0_7 = arith.constant 0 : index
    %c0_8 = arith.constant 0 : index
    %c0_9 = arith.constant 0 : index
    %16 = vector.load %arg3[%c0_6, %c0_7, %c0_8, %c0_9] : memref<4x8x8x8xf32, #tpu.memory_space<vmem>>, vector<4x8x8x8xf32>
    %17 = vector.extract_strided_slice %15 {offsets = [0, 0, 0], sizes = [4, 8, 1], strides = [1, 1, 1]} : vector<4x8x8xf32> to vector<4x8x1xf32>
    %18 = vector.shape_cast %17 : vector<4x8x1xf32> to vector<4x8xf32>
    %19 = vector.shape_cast %18 : vector<4x8xf32> to vector<4x8x1xf32>
    %20 = vector.extract_strided_slice %16 {offsets = [0, 0, 0, 0], sizes = [4, 1, 8, 8], strides = [1, 1, 1, 1]} : vector<4x8x8x8xf32> to vector<4x1x8x8xf32>
    %21 = vector.shape_cast %20 : vector<4x1x8x8xf32> to vector<4x8x8xf32>
    %22 = vector.broadcast %19 : vector<4x8x1xf32> to vector<4x8x8xf32>
    %23 = arith.mulf %22, %21 : vector<4x8x8xf32>
    %24 = vector.extract_strided_slice %15 {offsets = [0, 0, 1], sizes = [4, 8, 1], strides = [1, 1, 1]} : vector<4x8x8xf32> to vector<4x8x1xf32>
    %25 = vector.shape_cast %24 : vector<4x8x1xf32> to vector<4x8xf32>
    %26 = vector.shape_cast %25 : vector<4x8xf32> to vector<4x8x1xf32>
    %27 = vector.extract_strided_slice %16 {offsets = [0, 1, 0, 0], sizes = [4, 1, 8, 8], strides = [1, 1, 1, 1]} : vector<4x8x8x8xf32> to vector<4x1x8x8xf32>
    %28 = vector.shape_cast %27 : vector<4x1x8x8xf32> to vector<4x8x8xf32>
    %29 = vector.broadcast %26 : vector<4x8x1xf32> to vector<4x8x8xf32>
    %30 = arith.mulf %29, %28 : vector<4x8x8xf32>
    %31 = arith.addf %23, %30 : vector<4x8x8xf32>
    %32 = vector.extract_strided_slice %15 {offsets = [0, 0, 2], sizes = [4, 8, 1], strides = [1, 1, 1]} : vector<4x8x8xf32> to vector<4x8x1xf32>
    %33 = vector.shape_cast %32 : vector<4x8x1xf32> to vector<4x8xf32>
    %34 = vector.shape_cast %33 : vector<4x8xf32> to vector<4x8x1xf32>
    %35 = vector.extract_strided_slice %16 {offsets = [0, 2, 0, 0], sizes = [4, 1, 8, 8], strides = [1, 1, 1, 1]} : vector<4x8x8x8xf32> to vector<4x1x8x8xf32>
    %36 = vector.shape_cast %35 : vector<4x1x8x8xf32> to vector<4x8x8xf32>
    %37 = vector.broadcast %34 : vector<4x8x1xf32> to vector<4x8x8xf32>
    %38 = arith.mulf %37, %36 : vector<4x8x8xf32>
    %39 = arith.addf %31, %38 : vector<4x8x8xf32>
    %40 = vector.extract_strided_slice %15 {offsets = [0, 0, 3], sizes = [4, 8, 1], strides = [1, 1, 1]} : vector<4x8x8xf32> to vector<4x8x1xf32>
    %41 = vector.shape_cast %40 : vector<4x8x1xf32> to vector<4x8xf32>
    %42 = vector.shape_cast %41 : vector<4x8xf32> to vector<4x8x1xf32>
    %43 = vector.extract_strided_slice %16 {offsets = [0, 3, 0, 0], sizes = [4, 1, 8, 8], strides = [1, 1, 1, 1]} : vector<4x8x8x8xf32> to vector<4x1x8x8xf32>
    %44 = vector.shape_cast %43 : vector<4x1x8x8xf32> to vector<4x8x8xf32>
    %45 = vector.broadcast %42 : vector<4x8x1xf32> to vector<4x8x8xf32>
    %46 = arith.mulf %45, %44 : vector<4x8x8xf32>
    %47 = arith.addf %39, %46 : vector<4x8x8xf32>
    %48 = vector.extract_strided_slice %15 {offsets = [0, 0, 4], sizes = [4, 8, 1], strides = [1, 1, 1]} : vector<4x8x8xf32> to vector<4x8x1xf32>
    %49 = vector.shape_cast %48 : vector<4x8x1xf32> to vector<4x8xf32>
    %50 = vector.shape_cast %49 : vector<4x8xf32> to vector<4x8x1xf32>
    %51 = vector.extract_strided_slice %16 {offsets = [0, 4, 0, 0], sizes = [4, 1, 8, 8], strides = [1, 1, 1, 1]} : vector<4x8x8x8xf32> to vector<4x1x8x8xf32>
    %52 = vector.shape_cast %51 : vector<4x1x8x8xf32> to vector<4x8x8xf32>
    %53 = vector.broadcast %50 : vector<4x8x1xf32> to vector<4x8x8xf32>
    %54 = arith.mulf %53, %52 : vector<4x8x8xf32>
    %55 = arith.addf %47, %54 : vector<4x8x8xf32>
    %56 = vector.extract_strided_slice %15 {offsets = [0, 0, 5], sizes = [4, 8, 1], strides = [1, 1, 1]} : vector<4x8x8xf32> to vector<4x8x1xf32>
    %57 = vector.shape_cast %56 : vector<4x8x1xf32> to vector<4x8xf32>
    %58 = vector.shape_cast %57 : vector<4x8xf32> to vector<4x8x1xf32>
    %59 = vector.extract_strided_slice %16 {offsets = [0, 5, 0, 0], sizes = [4, 1, 8, 8], strides = [1, 1, 1, 1]} : vector<4x8x8x8xf32> to vector<4x1x8x8xf32>
    %60 = vector.shape_cast %59 : vector<4x1x8x8xf32> to vector<4x8x8xf32>
    %61 = vector.broadcast %58 : vector<4x8x1xf32> to vector<4x8x8xf32>
    %62 = arith.mulf %61, %60 : vector<4x8x8xf32>
    %63 = arith.addf %55, %62 : vector<4x8x8xf32>
    %64 = vector.extract_strided_slice %15 {offsets = [0, 0, 6], sizes = [4, 8, 1], strides = [1, 1, 1]} : vector<4x8x8xf32> to vector<4x8x1xf32>
    %65 = vector.shape_cast %64 : vector<4x8x1xf32> to vector<4x8xf32>
    %66 = vector.shape_cast %65 : vector<4x8xf32> to vector<4x8x1xf32>
    %67 = vector.extract_strided_slice %16 {offsets = [0, 6, 0, 0], sizes = [4, 1, 8, 8], strides = [1, 1, 1, 1]} : vector<4x8x8x8xf32> to vector<4x1x8x8xf32>
    %68 = vector.shape_cast %67 : vector<4x1x8x8xf32> to vector<4x8x8xf32>
    %69 = vector.broadcast %66 : vector<4x8x1xf32> to vector<4x8x8xf32>
    %70 = arith.mulf %69, %68 : vector<4x8x8xf32>
    %71 = arith.addf %63, %70 : vector<4x8x8xf32>
    %72 = vector.extract_strided_slice %15 {offsets = [0, 0, 7], sizes = [4, 8, 1], strides = [1, 1, 1]} : vector<4x8x8xf32> to vector<4x8x1xf32>
    %73 = vector.shape_cast %72 : vector<4x8x1xf32> to vector<4x8xf32>
    %74 = vector.shape_cast %73 : vector<4x8xf32> to vector<4x8x1xf32>
    %75 = vector.extract_strided_slice %16 {offsets = [0, 7, 0, 0], sizes = [4, 1, 8, 8], strides = [1, 1, 1, 1]} : vector<4x8x8x8xf32> to vector<4x1x8x8xf32>
    %76 = vector.shape_cast %75 : vector<4x1x8x8xf32> to vector<4x8x8xf32>
    %77 = vector.broadcast %74 : vector<4x8x1xf32> to vector<4x8x8xf32>
    %78 = arith.mulf %77, %76 : vector<4x8x8xf32>
    %79 = arith.addf %71, %78 : vector<4x8x8xf32>
    "tpu.trace_start"() <{level = 10 : i32, message = "gik,gjk->gij"}> : () -> ()
    %cst_10 = arith.constant dense<0.000000e+00> : vector<4x8x8xf32>
    %80 = tpu.matmul %7, %9, %cst_10 {dimension_numbers = #tpu.dot_dimension_numbers<[2], [2], [1], [1], [0, 0, 0, 1, 1, 1], [0], [0]>} : vector<4x8x16xf32>, vector<4x8x16xf32>, vector<4x8x8xf32> -> vector<4x8x8xf32>
    "tpu.trace_stop"() : () -> ()
    %81 = arith.addf %80, %79 : vector<4x8x8xf32>
    %cst_11 = arith.constant dense<0xFF800000> : vector<4x8xf32>
    %82 = vector.multi_reduction <maximumf>, %81, %cst_11 [2] : vector<4x8x8xf32> to vector<4x8xf32>
    %83 = vector.shape_cast %82 : vector<4x8xf32> to vector<4x8x1xf32>
    %84 = vector.broadcast %83 : vector<4x8x1xf32> to vector<4x8x8xf32>
    %85 = arith.subf %81, %84 : vector<4x8x8xf32>
    %86 = math.exp %85 : vector<4x8x8xf32>
    %cst_12 = arith.constant dense<0.000000e+00> : vector<4x8xf32>
    %87 = vector.multi_reduction <add>, %86, %cst_12 [2] : vector<4x8x8xf32> to vector<4x8xf32>
    %88 = vector.shape_cast %87 : vector<4x8xf32> to vector<4x8x1xf32>
    %89 = vector.broadcast %88 : vector<4x8x1xf32> to vector<4x8x8xf32>
    %90 = arith.divf %86, %89 : vector<4x8x8xf32>
    "tpu.trace_start"() <{level = 10 : i32, message = "gij,gjd->gid"}> : () -> ()
    %cst_13 = arith.constant dense<0.000000e+00> : vector<4x8x16xf32>
    %91 = tpu.matmul %90, %11, %cst_13 {dimension_numbers = #tpu.dot_dimension_numbers<[2], [1], [1], [2], [0, 0, 0, 1, 1, 2], [0], [0]>} : vector<4x8x8xf32>, vector<4x8x16xf32>, vector<4x8x16xf32> -> vector<4x8x16xf32>
    "tpu.trace_stop"() : () -> ()
    %c0_14 = arith.constant 0 : index
    %c0_15 = arith.constant 0 : index
    %c0_16 = arith.constant 0 : index
    %92 = vector.load %arg4[%c0_14, %c0_15, %c0_16] : memref<4x8x16xf32, #tpu.memory_space<vmem>>, vector<4x8x16xf32>
    tpu.vector_store %arg4[%c0_14, %c0_15, %c0_16], %91 {strides = array<i32>} : memref<4x8x16xf32, #tpu.memory_space<vmem>>, vector<4x8x16xf32>,
    return
  }
  func.func @transform_0(%arg0: i32) -> (i32, i32, i32) {
    %c0_i32 = arith.constant 0 : i32
    %c0_i32_0 = arith.constant 0 : i32
    %c0_i32_1 = arith.constant 0 : i32
    return %arg0, %c0_i32, %c0_i32_0 : i32, i32, i32
  }
  func.func @transform_1(%arg0: i32) -> (i32, i32) {
    %c0_i32 = arith.constant 0 : i32
    %c0_i32_0 = arith.constant 0 : i32
    %c0_i32_1 = arith.constant 0 : i32
    return %c0_i32, %c0_i32_0 : i32, i32
  }
  func.func @transform_2(%arg0: i32) -> (i32, i32, i32, i32) {
    %c0_i32 = arith.constant 0 : i32
    %c0_i32_0 = arith.constant 0 : i32
    %c0_i32_1 = arith.constant 0 : i32
    %c0_i32_2 = arith.constant 0 : i32
    return %arg0, %c0_i32, %c0_i32_0, %c0_i32_1 : i32, i32, i32, i32
  }
  func.func @transform_3(%arg0: i32) -> (i32, i32, i32) {
    %c0_i32 = arith.constant 0 : i32
    %c0_i32_0 = arith.constant 0 : i32
    %c0_i32_1 = arith.constant 0 : i32
    return %arg0, %c0_i32, %c0_i32_0 : i32, i32, i32
  }
}

</mosaic_0001>

<bundles_post_ra>
// kernel: tpu_custom_call.1
= control target key start
LH: loop header
LB: loop body
LE: loop exit
PB: predicated region body
PF: predicated region fallthrough
CT: control target
= control target key end

     0   :  { %8 = vsyncpa [#allocation3], 0  ;;  %s1043_s0 = inlined_call_operand.hbm [shape: f32[4,8,32], index: 0, kind: input, shape index: {}]   ;;  %s1044_s1 = inlined_call_operand.hbm [shape: f32[32,56], index: 1, kind: input, shape index: {}]   ;;  %s1045_s2 = inlined_call_operand.hbm [shape: f32[4,8,8,8], index: 2, kind: input, shape index: {}]   ;;  %s1046_s3 = inlined_call_operand.hbm [shape: f32[4,8,16], index: 3, kind: output, shape index: {}]  }
   0x1   :  { %9 = vsyncpa [#allocation6], 0 }
   0x2   :  { %10 = vsyncpa [#allocation4], 0  ;;  %s28_s14 = sshll.u32 %s1044_s1, 4  ;;  %s864_s15 = smov [#allocation5]   ;;  %s29_s14 = int_to_ptr.hbm [resolvable:$true] %s28_s14 }
   0x3   :  { %s30_s16 = sshll.u32 %s864_s15, 4  ;;  %s15_s19 = sshll.u32 %s1043_s0, 4  ;;  %s31_s16 = int_to_ptr.vmem [resolvable:$true] %s30_s16  ;;  %s16_s19 = int_to_ptr.hbm [resolvable:$true] %s15_s19 }
   0x4   :  { %s865_s20 = smov 128   ;;  %s866_s21 = smov 8  }
   0x5   :  { %36 = dma.hbm_to_vmem [thread:$0]  %s29_s14, 512, %s31_s16, [#allocation6], %s865_s20, %s865_s20, %s866_s21  }
   0x6   :  { %s867_s22 = smov [#allocation2]   ;;  %s41_s1 = sshll.u32 %s1045_s2, 4  ;;  %s42_s1 = int_to_ptr.hbm [resolvable:$true] %s41_s1 }
   0x7   :  { %s17_s23 = sshll.u32 %s867_s22, 4  ;;  %s868_s0 = smov [#allocation7]   ;;  %s18_s23 = int_to_ptr.vmem [resolvable:$true] %s17_s23 }
   0x8   :  { %23 = dma.hbm_to_vmem [thread:$0]  %s16_s19, 512, %s18_s23, [#allocation3], %s865_s20, %s865_s20, %s866_s21  }
   0x9   :  { %s43_s26 = sshll.u32 %s868_s0, 4  ;;  %s44_s26 = int_to_ptr.vmem [resolvable:$true] %s43_s26 }
   0xa   :  { %49 = dma.hbm_to_vmem [thread:$0]  %s42_s1, 4096, %s44_s26, [#allocation6], %s865_s20, %s865_s20, %s866_s21  }
   0xb   :  { %858 = dma.done.wait [#allocation3], 512  }
   0xc   :  { %859 = vsyncadd [#allocation3], 4294966784 }
   0xd   :  { %860 = dma.done.wait [#allocation6], 4608  }
   0xe   :  { %861 = vsyncadd [#allocation6], 4294962688  ;;  %v69_v0 = vld [vmem:[#allocation5 + $0x18] sm:$0xff]  ;;  %v68_v1 = vld [vmem:[#allocation5 + $0x10] sm:$0xff]  ;;  %vm70_vm0 = vcmask 261120   ;;  %v869_v8 = vmov 48  }
   0xf   :  { %95 = vmatpush.msra.mxu0 %v69_v0  ;;  %690 = vmatpush.msra.mxu3 %v69_v0  ;;  %v67_v2 = vld [vmem:[#allocation5 + $0x8] sm:$0xff]  ;;  %v66_v3 = vld [vmem:[#allocation5] sm:$0xff]  ;;  %v65_v5 = vld [vmem:[#allocation2 + $0x18] sm:$0xff]  ;;  %v870_v9 = vmov 50   ;;  %v871_v10 = vmov 51   ;;  %s872_s2 = smov 112  }
  0x10   :  { %v62_v4 = vld [vmem:[#allocation2] sm:$0xff]  ;;  %v63_v6 = vld [vmem:[#allocation2 + $0x8] sm:$0xff]  ;;  %v64_v7 = vld [vmem:[#allocation2 + $0x10] sm:$0xff]  ;;  %710 = vset.pattern.permute.xlu2 %v869_v8  ;;  %712 = vset.pattern.permute.xlu0 %v870_v9  ;;  %v873_v14 = vmov 49   ;;  %v874_v16 = vmov 52   ;;  %v875_v18 = vmov 54  }
  0x11   :  { %96 = vmatpush.msra.mxu0 %v68_v1  ;;  %691 = vmatpush.msra.mxu3 %v68_v1  ;;  %v876_v20 = vmov 53   ;;  %v877_v23 = vmov 55   ;;  %vm343_vm1 = vcmask 130048   ;;  %v117_v45 = vld [vmem:[#allocation7 + $0x8] sm:$0xff]  ;;  %v116_v47 = vld [vmem:[#allocation7] sm:$0xff]  ;;  %v118_v48 = vld [vmem:[#allocation7 + $0x10] sm:$0xff] }
  0x12   :  { %713 = vset.pattern.permute.xlu1 %v871_v10  ;;  %v119_v50 = vld [vmem:[#allocation7 + $0x18] sm:$0xff]  ;;  %v120_v58 = vld [vmem:[#allocation7 + $0x20] sm:$0xff]  ;;  %v121_v62 = vld [vmem:[#allocation7 + $0x28] sm:$0xff]  ;;  %vm449_vm2 = vcmask 64512   ;;  %s878_s27 = smov 96   ;;  %s879_s28 = smov [#allocation8]  }
  0x13   :  { %97 = vmatpush.msra.mxu0 %v67_v2  ;;  %692 = vmatpush.msra.mxu3 %v67_v2  ;;  %v125_v63 = vld [vmem:[#allocation7 + $0x48] sm:$0xff]  ;;  %s658_s29 = sshll.u32 %s879_s28, 4  ;;  %s660_s5 = sshll.u32 %s1046_s3, 4  ;;  %s659_s29 = int_to_ptr.vmem [resolvable:$true] %s658_s29  ;;  %s661_s5 = int_to_ptr.hbm [resolvable:$true] %s660_s5 }
  0x15   :  { %98 = vmatpush.msra.mxu0 %v66_v3  ;;  %693 = vmatpush.msra.mxu3 %v66_v3  ;;  %v124_v3 = vld [vmem:[#allocation7 + $0x40] sm:$0xff] }
  0x16   :  { %674 = vmatmul.msk.f32.vlgmr.msra.gmra.mxu0 %vm70_vm0, %v62_v4  ;;  %677 = vmatmul.msk.f32.vlgmr.msra.gmra.mxu3 %vm70_vm0, %v65_v5  ;;  %v126_v4 = vld [vmem:[#allocation7 + $0x50] sm:$0xff] }
  0x1e   :  { %675 = vmatmul.msk.f32.gmra.mxu0 %vm70_vm0, %v63_v6 }
  0x26   :  { %676 = vmatmul.msk.f32.gmra.mxu0 %vm70_vm0, %v64_v7  ;;  %v122_v7 = vld [vmem:[#allocation7 + $0x30] sm:$0xff] }
  0x93   :  { %v921_v11 = vpop.f32.mrf.mxu0 }
  0x94   :  { %v924_v12 = vmul.f32 0.20412415, %v921_v11  ;;  %341 = vrot.lane.b32.xlu0 %v921_v11, %s872_s2 }
  0x96   :  { %150 = vperm.xlu2 %710, %v924_v12  }
  0x99   :  { %v937_v17 = vpop.f32.mrf.mxu3 }
  0x9a   :  { %v943_v19 = vmul.f32 0.20412415, %v937_v17 }
  0x9b   :  { %v928_v13 = vpop.f32.mrf.mxu0 }
  0x9c   :  { %369 = vrot.lane.b32.xlu0 %v928_v13, %s872_s2  ;;  %v113_v21 = vmul.f32 0.20412415, %v928_v13 }
  0x9e   :  { %711 = vset.pattern.permute.xlu2 %v873_v14 }
  0x9f   :  { %173 = vperm.xlu2 %711, %v924_v12  }
  0xa3   :  { %v932_v15 = vpop.f32.mrf.mxu0 }
  0xa4   :  { %197 = vperm.xlu0 %712, %v924_v12   ;;  %396 = vrot.lane.b32.xlu1 %v932_v15, %s872_s2  ;;  %v114_v22 = vmul.f32 0.20412415, %v932_v15 }
  0xa7   :  { %714 = vset.pattern.permute.xlu2 %v874_v16 }
  0xa8   :  { %245 = vperm.xlu2 %714, %v924_v12  }
  0xac   :  { %721 = vset.pattern.permute.xlu0 %v875_v18  ;;  %423 = vrot.lane.b32.xlu1 %v937_v17, %s872_s2 }
  0xad   :  { %293 = vperm.xlu0 %721, %v924_v12  }
  0xb0   :  { %716 = vset.pattern.permute.xlu2 %v869_v8 }
  0xb1   :  { %165 = vperm.xlu2 %716, %v943_v19  }
  0xb4   :  { %221 = vperm.xlu1 %713, %v924_v12  }
  0xb5   :  { %728 = vset.pattern.permute.xlu0 %v876_v20 }
  0xb6   :  { %281 = vperm.xlu0 %728, %v943_v19  }
  0xb9   :  { %718 = vset.pattern.permute.xlu2 %v876_v20 }
  0xba   :  { %269 = vperm.xlu2 %718, %v924_v12  }
  0xbc   :  { %715 = vset.pattern.permute.xlu1 %v869_v8 }
  0xbd   :  { %155 = vperm.xlu1 %715, %v113_v21  }
  0xbe   :  { %729 = vset.pattern.permute.xlu0 %v873_v14 }
  0xbf   :  { %177 = vperm.xlu0 %729, %v113_v21  }
  0xc2   :  { %720 = vset.pattern.permute.xlu2 %v870_v9 }
  0xc3   :  { %209 = vperm.xlu2 %720, %v943_v19  }
  0xc5   :  { %717 = vset.pattern.permute.xlu1 %v873_v14 }
  0xc6   :  { %185 = vperm.xlu1 %717, %v943_v19  }
  0xc7   :  { %181 = vperm.xlu0 %729, %v114_v22  }
  0xcb   :  { %723 = vset.pattern.permute.xlu2 %v871_v10 }
  0xcc   :  { %233 = vperm.xlu2 %723, %v943_v19  }
  0xce   :  { %719 = vset.pattern.permute.xlu1 %v870_v9 }
  0xcf   :  { %201 = vperm.xlu1 %719, %v113_v21   ;;  %733 = vset.pattern.permute.xlu0 %v877_v23 }
  0xd0   :  { %321 = vperm.xlu0 %733, %v113_v21  }
  0xd4   :  { %726 = vset.pattern.permute.xlu2 %v874_v16 }
  0xd5   :  { %257 = vperm.xlu2 %726, %v943_v19  }
  0xd7   :  { %722 = vset.pattern.permute.xlu1 %v871_v10 }
  0xd8   :  { %225 = vperm.xlu1 %722, %v113_v21  }
  0xdd   :  { %727 = vset.pattern.permute.xlu2 %v876_v20 }
  0xde   :  { %273 = vperm.xlu2 %727, %v113_v21  }
  0xe0   :  { %724 = vset.pattern.permute.xlu1 %v877_v23 }
  0xe1   :  { %317 = vperm.xlu1 %724, %v924_v12  }
  0xe6   :  { %730 = vset.pattern.permute.xlu2 %v875_v18 }
  0xe7   :  { %297 = vperm.xlu2 %730, %v113_v21  }
  0xe9   :  { %725 = vset.pattern.permute.xlu1 %v874_v16 }
  0xea   :  { %249 = vperm.xlu1 %725, %v113_v21  }
  0xef   :  { %732 = vset.pattern.permute.xlu2 %v869_v8  ;;  %v127_v8 = vld [vmem:[#allocation7 + $0x58] sm:$0xff] }
  0xf0   :  { %160 = vperm.xlu2 %732, %v114_v22   ;;  %v151_v27 = vpop.permute.xlu2 %150 }
  0xf1   :  { %v168_v53 = vmul.f32 %v151_v27, %v116_v47  ;;  %v140_v27 = vld [vmem:[#allocation7 + $0xc0] sm:$0xff] }
  0xf2   :  { %731 = vset.pattern.permute.xlu1 %v875_v18 }
  0xf3   :  { %305 = vperm.xlu1 %731, %v943_v19  }
  0xf8   :  { %737 = vset.pattern.permute.xlu2 %v874_v16 }
  0xf9   :  { %253 = vperm.xlu2 %737, %v114_v22   ;;  %v174_v29 = vpop.permute.xlu2 %173 }
  0xfa   :  { %v188_v49 = vmul.f32 %v174_v29, %v117_v45 }
  0xfb   :  { %734 = vset.pattern.permute.xlu1 %v877_v23 }
  0xfc   :  { %329 = vperm.xlu1 %734, %v943_v19   ;;  %v192_v55 = vadd.f32 %v188_v49, %v168_v53  ;;  %v132_v49 = vld [vmem:[#allocation7 + $0x80] sm:$0xff] }
 0x101   :  { %738 = vset.pattern.permute.xlu2 %v876_v20 }
 0x102   :  { %277 = vperm.xlu2 %738, %v114_v22   ;;  %v246_v31 = vpop.permute.xlu2 %245 }
 0x103   :  { %v260_v61 = vmul.f32 %v246_v31, %v120_v58 }
 0x104   :  { %735 = vset.pattern.permute.xlu1 %v870_v9  ;;  %v123_v9 = vld [vmem:[#allocation7 + $0x38] sm:$0xff] }
 0x105   :  { %205 = vperm.xlu1 %735, %v114_v22  }
 0x106   :  { %v342_v24 = vpop.permute.xlu0 %341 }
 0x107   :  { %678 = vmatpush.xpose.msk.msra.mxu1 %vm343_vm1, %v342_v24 }
 0x10a   :  { %679 = vmatmul.msk.f32.vlgmr.msra.gmra.mxu1 %vm343_vm1, %v924_v12  ;;  %740 = vset.pattern.permute.xlu2 %v877_v23  ;;  %v141_v23 = vld [vmem:[#allocation7 + $0xc8] sm:$0xff] }
 0x10b   :  { %325 = vperm.xlu2 %740, %v114_v22   ;;  %v980_v33 = vpop.permute.xlu2 %165 }
 0x10d   :  { %736 = vset.pattern.permute.xlu1 %v871_v10 }
 0x10e   :  { %v370_v25 = vpop.permute.xlu0 %369  ;;  %229 = vperm.xlu1 %736, %v114_v22  }
 0x10f   :  { %680 = vmatpush.xpose.msk.msra.mxu2 %vm343_vm1, %v370_v25 }
 0x112   :  { %681 = vmatmul.msk.f32.vlgmr.msra.gmra.mxu2 %vm343_vm1, %v113_v21 }
 0x114   :  { %v270_v35 = vpop.permute.xlu2 %269 }
 0x115   :  { %v284_v5 = vmul.f32 %v270_v35, %v121_v62 }
 0x116   :  { %v397_v26 = vpop.permute.xlu1 %396  ;;  %739 = vset.pattern.permute.xlu1 %v875_v18  ;;  %v198_v40 = vpop.permute.xlu0 %197  ;;  %v128_v18 = vld [vmem:[#allocation7 + $0x60] sm:$0xff] }
 0x117   :  { %682 = vmatpush.xpose.msk.msrb.mxu3 %vm343_vm1, %v397_v26  ;;  %301 = vperm.xlu1 %739, %v114_v22   ;;  %v212_v54 = vmul.f32 %v198_v40, %v118_v48  ;;  %v129_v40 = vld [vmem:[#allocation7 + $0x68] sm:$0xff]  ;;  %v130_v48 = vld [vmem:[#allocation7 + $0x70] sm:$0xff] }
 0x119   :  { %v216_v57 = vadd.f32 %v212_v54, %v192_v55  ;;  %v143_v54 = vld [vmem:[#allocation7 + $0xd8] sm:$0xff]  ;;  %v133_v55 = vld [vmem:[#allocation7 + $0x88] sm:$0xff] }
 0x11a   :  { %683 = vmatmul.msk.f32.vlgmr.msrb.gmra.mxu3 %vm343_vm1, %v114_v22 }
 0x11d   :  { %v982_v37 = vpop.permute.xlu2 %209 }
 0x11e   :  { %v424_v28 = vpop.permute.xlu1 %423 }
 0x11f   :  { %684 = vmatpush.xpose.msk.msrb.mxu1 %vm343_vm1, %v424_v28  ;;  %v294_v43 = vpop.permute.xlu0 %293 }
 0x122   :  { %685 = vmatmul.msk.f32.vlgmr.msrb.gmra.mxu1 %vm343_vm1, %v943_v19  ;;  %v308_v19 = vmul.f32 %v294_v43, %v122_v7 }
 0x126   :  { %v222_v30 = vpop.permute.xlu1 %221  ;;  %v984_v39 = vpop.permute.xlu2 %233 }
 0x127   :  { %v236_v56 = vmul.f32 %v222_v30, %v119_v50 }
 0x128   :  { %v988_v51 = vpop.permute.xlu0 %281 }
 0x129   :  { %v240_v60 = vadd.f32 %v236_v56, %v216_v57  ;;  %v134_v56 = vld [vmem:[#allocation7 + $0x90] sm:$0xff] }
 0x12b   :  { %v264_v2 = vadd.f32 %v260_v61, %v240_v60  ;;  %v131_v60 = vld [vmem:[#allocation7 + $0x78] sm:$0xff] }
 0x12d   :  { %v288_v14 = vadd.f32 %v284_v5, %v264_v2 }
 0x12f   :  { %v156_v32 = vpop.permute.xlu1 %155  ;;  %v986_v42 = vpop.permute.xlu2 %257  ;;  %v312_v26 = vadd.f32 %v308_v19, %v288_v14 }
 0x130   :  { %v169_v10 = vmul.f32 %v156_v32, %v124_v3 }
 0x131   :  { %v178_v0 = vpop.permute.xlu0 %177 }
 0x132   :  { %v189_v6 = vmul.f32 %v178_v0, %v125_v63  ;;  %v239_v63 = vmul.f32 %v984_v39, %v143_v54 }
 0x134   :  { %v193_v20 = vadd.f32 %v189_v6, %v169_v10 }
 0x138   :  { %v186_v34 = vpop.permute.xlu1 %185  ;;  %v274_v46 = vpop.permute.xlu2 %273 }
 0x139   :  { %v182_v28 = vpop.permute.xlu0 %181  ;;  %v191_v30 = vmul.f32 %v186_v34, %v141_v23 }
 0x13a   :  { %v190_v0 = vmul.f32 %v182_v28, %v133_v55 }
 0x141   :  { %v202_v36 = vpop.permute.xlu1 %201  ;;  %v298_v59 = vpop.permute.xlu2 %297 }
 0x142   :  { %v213_v12 = vmul.f32 %v202_v36, %v126_v4  ;;  %v171_v36 = vmul.f32 %v980_v33, %v140_v27  ;;  %v309_v57 = vmul.f32 %v298_v59, %v130_v48  ;;  %v322_v61 = vpop.permute.xlu0 %321  ;;  %v144_v4 = vld [vmem:[#allocation7 + $0xe0] sm:$0xff]  ;;  %v145_v59 = vld [vmem:[#allocation7 + $0xe8] sm:$0xff] }
 0x143   :  { %v333_v6 = vmul.f32 %v322_v61, %v131_v60 }
 0x144   :  { %v217_v24 = vadd.f32 %v213_v12, %v193_v20  ;;  %v195_v47 = vadd.f32 %v191_v30, %v171_v36  ;;  %v136_v12 = vld [vmem:[#allocation7 + $0xa0] sm:$0xff] }
 0x14a   :  { %v226_v38 = vpop.permute.xlu1 %225  ;;  %v161_v16 = vpop.permute.xlu2 %160 }
 0x14b   :  { %v237_v21 = vmul.f32 %v226_v38, %v127_v8  ;;  %v142_v38 = vld [vmem:[#allocation7 + $0xd0] sm:$0xff]  ;;  %v170_v58 = vmul.f32 %v161_v16, %v132_v49  ;;  %v263_v8 = vmul.f32 %v986_v42, %v144_v4 }
 0x14c   :  { %v215_v34 = vmul.f32 %v982_v37, %v142_v38  ;;  %v146_v16 = vld [vmem:[#allocation7 + $0xf0] sm:$0xff] }
 0x14d   :  { %v241_v31 = vadd.f32 %v237_v21, %v217_v24  ;;  %v194_v37 = vadd.f32 %v190_v0, %v170_v58  ;;  %v147_v21 = vld [vmem:[#allocation7 + $0xf8] sm:$0xff]  ;;  %v138_v42 = vld [vmem:[#allocation7 + $0xb0] sm:$0xff] }
 0x14e   :  { %v219_v33 = vadd.f32 %v215_v34, %v195_v47 }
 0x150   :  { %v243_v5 = vadd.f32 %v239_v63, %v219_v33 }
 0x152   :  { %v267_v19 = vadd.f32 %v263_v8, %v243_v5 }
 0x153   :  { %v318_v41 = vpop.permute.xlu1 %317  ;;  %v254_v50 = vpop.permute.xlu2 %253 }
 0x154   :  { %v332_v22 = vmul.f32 %v318_v41, %v123_v9  ;;  %v285_v41 = vmul.f32 %v274_v46, %v129_v40  ;;  %v135_v46 = vld [vmem:[#allocation7 + $0x98] sm:$0xff]  ;;  %v262_v23 = vmul.f32 %v254_v50, %v136_v12 }
 0x156   :  { %v336_v35 = vadd.f32 %v332_v22, %v312_v26  ;;  %v287_v22 = vmul.f32 %v988_v51, %v145_v59  ;;  %v137_v26 = vld [vmem:[#allocation7 + $0xa8] sm:$0xff] }
 0x158   :  { %v291_v28 = vadd.f32 %v287_v22, %v267_v19 }
 0x15c   :  { %v250_v44 = vpop.permute.xlu1 %249  ;;  %v278_v14 = vpop.permute.xlu2 %277 }
 0x15d   :  { %v261_v25 = vmul.f32 %v250_v44, %v128_v18 }
 0x15f   :  { %v265_v45 = vadd.f32 %v261_v25, %v241_v31  ;;  %v286_v31 = vmul.f32 %v278_v14, %v137_v26 }
 0x161   :  { %v289_v53 = vadd.f32 %v285_v41, %v265_v45  ;;  %v139_v45 = vld [vmem:[#allocation7 + $0xb8] sm:$0xff] }
 0x163   :  { %v313_v3 = vadd.f32 %v309_v57, %v289_v53 }
 0x165   :  { %v990_v52 = vpop.permute.xlu1 %305  ;;  %v337_v10 = vadd.f32 %v333_v6, %v313_v3  ;;  %v326_v51 = vpop.permute.xlu2 %325 }
 0x166   :  { %v311_v24 = vmul.f32 %v990_v52, %v146_v16  ;;  %v334_v47 = vmul.f32 %v326_v51, %v139_v45 }
 0x16e   :  { %v992_v1 = vpop.permute.xlu1 %329 }
 0x177   :  { %v206_v29 = vpop.permute.xlu1 %205 }
 0x178   :  { %v214_v2 = vmul.f32 %v206_v29, %v134_v56  ;;  %v335_v29 = vmul.f32 %v992_v1, %v147_v21 }
 0x17a   :  { %v218_v9 = vadd.f32 %v214_v2, %v194_v37  ;;  %v741_v37 = vpack.i.bf16 %v937_v17, %v928_v13 }
 0x180   :  { %v230_v62 = vpop.permute.xlu1 %229 }
 0x181   :  { %v238_v7 = vmul.f32 %v230_v62, %v135_v46 }
 0x183   :  { %v242_v20 = vadd.f32 %v238_v7, %v218_v9 }
 0x185   :  { %v266_v30 = vadd.f32 %v262_v23, %v242_v20 }
 0x187   :  { %v365_v32 = vpop.f32.mrf.mxu1 }
 0x188   :  { %v995_v43 = vadd.f32 %v365_v32, %v336_v35  ;;  %v315_v35 = vadd.f32 %v311_v24, %v291_v28  ;;  %v290_v32 = vadd.f32 %v286_v31, %v266_v30 }
 0x189   :  { %v302_v27 = vpop.permute.xlu1 %301 }
 0x18a   :  { %v450_v44 = vsel %vm449_vm2, %v995_v43, -inf  ;;  %v310_v40 = vmul.f32 %v302_v27, %v138_v42  ;;  %v339_v36 = vadd.f32 %v335_v29, %v315_v35 }
 0x18b   :  { %451 = vmax.xlane.f32.xlu0 %v450_v44 }
 0x18c   :  { %v314_v41 = vadd.f32 %v310_v40, %v290_v32 }
 0x18e   :  { %v338_v49 = vadd.f32 %v334_v47, %v314_v41 }
 0x195   :  { %v392_v18 = vpop.f32.mrf.mxu2 }
 0x196   :  { %v393_v39 = vadd.f32 %v392_v18, %v337_v10 }
 0x198   :  { %v453_v25 = vsel %vm449_vm2, %v393_v39, -inf }
 0x199   :  { %454 = vmax.xlane.f32.xlu1 %v453_v25 }
 0x19d   :  { %v419_v48 = vpop.f32.mrf.mxu3 }
 0x19e   :  { %v420_v50 = vadd.f32 %v419_v48, %v338_v49 }
 0x19f   :  { %v446_v38 = vpop.f32.mrf.mxu1 }
 0x1a0   :  { %v447_v52 = vadd.f32 %v446_v38, %v339_v36  ;;  %v456_v1 = vsel %vm449_vm2, %v420_v50, -inf }
 0x1a2   :  { %v459_v44 = vsel %vm449_vm2, %v447_v52, -inf }
 0x1a3   :  { %460 = vmax.xlane.f32.xlu2 %v459_v44 }
 0x1ab   :  { %457 = vmax.xlane.f32.xlu2 %v456_v1 }
 0x1fe   :  { %v452_v34 = vpop.xlane.xlu0 %451 }
 0x1ff   :  { %v462_v53 = vsub.f32 %v995_v43, %v452_v34 }
 0x201   :  { %v466_v54 = vmul.f32 1.442695, %v462_v53 }
 0x203   :  { %746 = vpow2.f32 %v466_v54 }
 0x209   :  { %v1009_v55 = vpop.eup %746 }
 0x20a   :  { %v474_v56 = vsel %vm449_vm2, %v1009_v55, 0.0 }
 0x20b   :  { %475 = vadd.xlane.f32.xlu0 %v474_v56 }
 0x20c   :  { %v455_v33 = vpop.xlane.xlu1 %454 }
 0x20d   :  { %v463_v57 = vsub.f32 %v393_v39, %v455_v33 }
 0x20f   :  { %v468_v58 = vmul.f32 1.442695, %v463_v57 }
 0x211   :  { %748 = vpow2.f32 %v468_v58 }
 0x216   :  { %v461_v60 = vpop.xlane.xlu2 %460 }
 0x217   :  { %v749_v61 = vpop.eup %748  ;;  %v465_v46 = vsub.f32 %v447_v52, %v461_v60 }
 0x218   :  { %v477_v62 = vsel %vm449_vm2, %v749_v61, 0.0 }
 0x219   :  { %v472_v63 = vmul.f32 1.442695, %v465_v46  ;;  %478 = vadd.xlane.f32.xlu1 %v477_v62 }
 0x21b   :  { %750 = vpow2.f32 %v472_v63 }
 0x21e   :  { %v458_v43 = vpop.xlane.xlu2 %457 }
 0x21f   :  { %v464_v0 = vsub.f32 %v420_v50, %v458_v43 }
 0x221   :  { %v1014_v2 = vpop.eup %750  ;;  %v470_v3 = vmul.f32 1.442695, %v464_v0 }
 0x222   :  { %v483_v4 = vsel %vm449_vm2, %v1014_v2, 0.0 }
 0x223   :  { %752 = vpow2.f32 %v470_v3  ;;  %484 = vadd.xlane.f32.xlu2 %v483_v4 }
 0x229   :  { %v1018_v5 = vpop.eup %752 }
 0x22a   :  { %v480_v6 = vsel %vm449_vm2, %v1018_v5, 0.0 }
 0x22b   :  { %481 = vadd.xlane.f32.xlu0 %v480_v6 }
 0x232   :  { %546 = vrot.lane.b32.xlu1 %v921_v11, %s878_s27 }
 0x23b   :  { %742 = vrot.lane.b32.xlu2 %v741_v37, %s878_s27 }
 0x23f   :  { %598 = vrot.lane.b32.xlu0 %v932_v15, %s878_s27 }
 0x27e   :  { %v476_v7 = vpop.xlane.xlu0 %475 }
 0x27f   :  { %754 = vrcp.f32 %v476_v7  ;;  %v497_v39 = vand.u32 2147483648, %v476_v7  ;;  %vm491_vm7 = vweird.f32 %v476_v7  ;;  %v495_v21 = vand.u32 2147483647, %v476_v7 }
 0x281   :  { %v498_v29 = vor.u32 1.1754944e-38, %v497_v39  ;;  %vm496_vm10 = vcmp.eq.f32.partialorder %v495_v21, 8.507059e+37 }
 0x285   :  { %v755_v8 = vpop.eup %754 }
 0x286   :  { %v487_v10 = vmul.f32 %v755_v8, %v476_v7  ;;  %vm492_vm4 = vweird.f32 %v755_v8 }
 0x287   :  { %vm493_vm8 = vmor %vm491_vm7, %vm492_vm4 }
 0x288   :  { %v488_v59 = vsub.f32 1.0, %v487_v10 }
 0x28a   :  { %v489_v16 = vmul.f32 %v755_v8, %v488_v59 }
 0x28c   :  { %v479_v9 = vpop.xlane.xlu1 %478  ;;  %v490_v17 = vadd.f32 %v755_v8, %v489_v16 }
 0x28d   :  { %756 = vrcp.f32 %v479_v9  ;;  %v512_v20 = vand.u32 2147483648, %v479_v9  ;;  %v510_v13 = vand.u32 2147483647, %v479_v9  ;;  %vm506_vm5 = vweird.f32 %v479_v9 }
 0x28e   :  { %v494_v28 = vsel %vm493_vm8, %v755_v8, %v490_v17 }
 0x28f   :  { %v513_v23 = vor.u32 1.1754944e-38, %v512_v20  ;;  %vm511_vm9 = vcmp.eq.f32.partialorder %v510_v13, 8.507059e+37  ;;  %v499_v40 = vsel %vm496_vm10, %v498_v29, %v494_v28 }
 0x290   :  { %v500_v41 = vmul.f32 %v1009_v55, %v499_v40 }
 0x293   :  { %v757_v12 = vpop.eup %756 }
 0x294   :  { %v502_v14 = vmul.f32 %v757_v12, %v479_v9  ;;  %vm507_vm3 = vweird.f32 %v757_v12 }
 0x295   :  { %vm508_vm6 = vmor %vm506_vm5, %vm507_vm3 }
 0x296   :  { %v503_v18 = vsub.f32 1.0, %v502_v14  ;;  %v485_v19 = vpop.xlane.xlu2 %484 }
 0x297   :  { %758 = vrcp.f32 %v485_v19  ;;  %v542_v36 = vand.u32 2147483648, %v485_v19  ;;  %vm536_vm12 = vweird.f32 %v485_v19  ;;  %v540_v51 = vand.u32 2147483647, %v485_v19 }
 0x298   :  { %v504_v11 = vmul.f32 %v757_v12, %v503_v18 }
 0x299   :  { %v543_v49 = vor.u32 1.1754944e-38, %v542_v36  ;;  %vm541_vm14 = vcmp.eq.f32.partialorder %v540_v51, 8.507059e+37 }
 0x29a   :  { %v505_v15 = vadd.f32 %v757_v12, %v504_v11 }
 0x29c   :  { %v509_v22 = vsel %vm508_vm6, %v757_v12, %v505_v15 }
 0x29d   :  { %v759_v24 = vpop.eup %758  ;;  %v514_v25 = vsel %vm511_vm9, %v513_v23, %v509_v22 }
 0x29e   :  { %v532_v26 = vmul.f32 %v759_v24, %v485_v19  ;;  %v482_v42 = vpop.xlane.xlu0 %481  ;;  %v743_v27 = vpop.permute.xlu2 %742  ;;  %v515_v35 = vmul.f32 %v749_v61, %v514_v25  ;;  %vm537_vm11 = vweird.f32 %v759_v24 }
 0x29f   :  { %760 = vrcp.f32 %v482_v42  ;;  %v744_v31 = vunpack.i.l.bf16 %v743_v27  ;;  %vm538_vm13 = vmor %vm536_vm12, %vm537_vm11  ;;  %v745_v47 = vunpack.i.h.bf16 %v743_v27  ;;  %v527_v34 = vand.u32 2147483648, %v482_v42 }
 0x2a0   :  { %v533_v30 = vsub.f32 1.0, %v532_v26  ;;  %v525_v54 = vand.u32 2147483647, %v482_v42  ;;  %vm521_vm0 = vweird.f32 %v482_v42 }
 0x2a1   :  { %593 = vmatpush.msra.mxu3 %v744_v31  ;;  %v528_v33 = vor.u32 1.1754944e-38, %v527_v34 }
 0x2a2   :  { %v534_v32 = vmul.f32 %v759_v24, %v533_v30  ;;  %687 = vmatmul.msk.f32.vlgmr.msra.gmra.mxu3 %vm449_vm2, %v515_v35  ;;  %vm526_vm4 = vcmp.eq.f32.partialorder %v525_v54, 8.507059e+37 }
 0x2a4   :  { %v535_v45 = vadd.f32 %v759_v24, %v534_v32  ;;  %v547_v38 = vpop.permute.xlu1 %546 }
 0x2a5   :  { %v761_v52 = vpop.eup %760  ;;  %567 = vmatpush.msrb.mxu2 %v547_v38 }
 0x2a6   :  { %v539_v44 = vsel %vm538_vm13, %v759_v24, %v535_v45  ;;  %v517_v48 = vmul.f32 %v761_v52, %v482_v42  ;;  %686 = vmatmul.msk.f32.vlgmr.msrb.gmra.mxu2 %vm449_vm2, %v500_v41  ;;  %vm522_vm15 = vweird.f32 %v761_v52 }
 0x2a7   :  { %645 = vmatpush.msra.mxu2 %v745_v47  ;;  %v544_v1 = vsel %vm541_vm14, %v543_v49, %v539_v44  ;;  %vm523_vm3 = vmor %vm521_vm0, %vm522_vm15 }
 0x2a8   :  { %v518_v50 = vsub.f32 1.0, %v517_v48  ;;  %v545_v55 = vmul.f32 %v1014_v2, %v544_v1 }
 0x2aa   :  { %v519_v53 = vmul.f32 %v761_v52, %v518_v50 }
 0x2ac   :  { %v520_v56 = vadd.f32 %v761_v52, %v519_v53 }
 0x2ae   :  { %v524_v57 = vsel %vm523_vm3, %v761_v52, %v520_v56  ;;  %689 = vmatmul.msk.f32.vlgmr.msra.gmra.mxu2 %vm449_vm2, %v545_v55 }
 0x2af   :  { %v529_v58 = vsel %vm526_vm4, %v528_v33, %v524_v57 }
 0x2b0   :  { %v530_v60 = vmul.f32 %v1018_v5, %v529_v58 }
 0x2b1   :  { %v599_v61 = vpop.permute.xlu0 %598 }
 0x2b2   :  { %619 = vmatpush.msra.mxu1 %v599_v61 }
 0x2b3   :  { %688 = vmatmul.msk.f32.vlgmr.msra.gmra.mxu1 %vm449_vm2, %v530_v60 }
 0x325   :  { %v595_v46 = vpop.f32.mrf.mxu3 }
 0x326   :  { %651 = vst.msk [vmem:[#allocation8 + $0x8] sm:$0xff] %vm343_vm1, %v595_v46 }
 0x329   :  { %v569_v62 = vpop.f32.mrf.mxu2 }
 0x32a   :  { %650 = vst.msk [vmem:[#allocation8] sm:$0xff] %vm343_vm1, %v569_v62 }
 0x330   :  { %v621_v63 = vpop.f32.mrf.mxu1 }
 0x331   :  { %652 = vst.msk [vmem:[#allocation8 + $0x10] sm:$0xff] %vm343_vm1, %v621_v63  ;;  %v647_v43 = vpop.f32.mrf.mxu2 }
 0x332   :  { %653 = vst.msk [vmem:[#allocation8 + $0x18] sm:$0xff] %vm343_vm1, %v647_v43 }
 0x333   :  { %666 = dma.vmem_to_hbm [thread:$0]  %s659_s29, 512, %s661_s5, [#allocation4], %s865_s20, %s865_s20, %s866_s21  }
 0x334   :  { %862 = dma.done.wait [#allocation4], 512  }
 0x335   :  { %863 = vsyncadd [#allocation4], 4294966784 }
 0x336   :  { %671 = vsyncpa [#allocation3], 1 }
 0x337   :  { %672 = vsyncpa [#allocation6], 1 }
 0x338   :  { %673 = vsyncpa [#allocation4], 1 }

</bundles_post_ra>
